<compile_context>
chip_gen: v7x
topology: tpu7x:2x2x1
jax: 0.10.0
libtpu: 0.0.40
codegen_flags: <defaults>
</compile_context>

<pallas_src>
import jax
import jax.numpy as jnp
from jax.experimental import pallas as pl
from jax.experimental.pallas import tpu as pltpu


def scale_mul_kernel(scale_ref, x_ref, o_ref):
    # scale_ref: (1, TC, 1), x_ref: (1, TC, HW) -> broadcast multiply on the VPU.
    o_ref[...] = scale_ref[...] * x_ref[...]


def _default_num_blocks():
    # v7x has 2 TensorCores per chip; shard channels across them via a parallel
    # grid axis of size 2. v5e/v6e (1 TC) prefer a single block (grid of 1 step).
    try:
        kind = jax.devices()[0].device_kind.lower()
    except Exception:
        return 1
    return 2 if ("v7" in kind or "7x" in kind) else 1


def layer_scale_mul(layer_scale, x, *, num_blocks=None):
    """layer_scale: (C, 1, 1), x: (N, C, H, W) -> (N, C, H, W)."""
    n, c, h, w = x.shape
    hw = h * w

    if num_blocks is None:
        num_blocks = _default_num_blocks()
    # Channel tile must keep the sublane dim a multiple of 8; fall back to 1 block.
    if num_blocks < 1 or c % (num_blocks * 8) != 0:
        num_blocks = 1
    tc = c // num_blocks

    # Channels on the sublane axis, flattened spatial dims on the lane (fast) axis.
    x3d = x.reshape(n, c, hw)
    s3d = layer_scale.reshape(1, c, 1).astype(x.dtype)

    out3d = pl.pallas_call(
        scale_mul_kernel,
        out_shape=jax.ShapeDtypeStruct((n, c, hw), x.dtype),
        grid_spec=pltpu.PrefetchScalarGridSpec(
            num_scalar_prefetch=0,
            grid=(n, num_blocks),
            in_specs=[
                # Scale: one (1, tc, 1) block per channel-split; independent of the
                # batch axis, so it is delivered once and stays resident.
                pl.BlockSpec((1, tc, 1), lambda b, i: (0, i, 0)),
                # Activations: one (1, tc, hw) block per (batch, channel-split).
                pl.BlockSpec((1, tc, hw), lambda b, i: (b, i, 0)),
            ],
            out_specs=pl.BlockSpec((1, tc, hw), lambda b, i: (b, i, 0)),
        ),
        compiler_params=pltpu.CompilerParams(
            dimension_semantics=("parallel", "parallel"),
        ),
    )(s3d, x3d)

    return out3d.reshape(n, c, h, w)


if __name__ == "__main__":
    key = jax.random.PRNGKey(0)
    k_scale, k_x = jax.random.split(key)

    # Module shapes: layer_scale13 ~ U[0,1) of shape (768, 1, 1); input (1, 768, 14, 14).
    layer_scale = jax.random.uniform(k_scale, (768, 1, 1), dtype=jnp.float32)
    x169 = jax.random.normal(k_x, (1, 768, 14, 14), dtype=jnp.float32)

    x170 = layer_scale_mul(layer_scale, x169)
    jax.block_until_ready(x170)

    # Correctness check against plain JAX broadcasting (same semantics as torch mul).
    ref = layer_scale * x169
    assert x170.shape == (1, 768, 14, 14)
    assert jnp.allclose(x170, ref), "mismatch vs reference"

    print("KERNEL_OK")
</pallas_src>

<mosaic_0001>
module attributes {stable_mosaic.version = 11 : i64} {
  func.func @scale_mul_kernel(%arg0: i32, %arg1: i32, %arg2: memref<1x768x1xf32, #tpu.memory_space<vmem>>, %arg3: memref<1x768x196xf32, #tpu.memory_space<vmem>>, %arg4: memref<1x768x196xf32, #tpu.memory_space<vmem>>) attributes {dimension_semantics = [#tpu.dimension_semantics<parallel>, #tpu.dimension_semantics<parallel>], iteration_bounds = array<i64: 1, 1>, scalar_prefetch = 0 : i64, scratch_operands = 0 : i64, tpu.core_type = #tpu.core_type<tc>, window_params = [{transform_indices = @transform_0, window_bounds = array<i64: 1, 768, 1>}, {transform_indices = @transform_1, window_bounds = array<i64: 1, 768, 196>}, {transform_indices = @transform_2, window_bounds = array<i64: 1, 768, 196>}]} {
    %c0 = arith.constant 0 : index
    %c0_0 = arith.constant 0 : index
    %c0_1 = arith.constant 0 : index
    %0 = vector.load %arg2[%c0, %c0_0, %c0_1] : memref<1x768x1xf32, #tpu.memory_space<vmem>>, vector<1x768x1xf32>
    %c0_2 = arith.constant 0 : index
    %c0_3 = arith.constant 0 : index
    %c0_4 = arith.constant 0 : index
    %1 = vector.load %arg3[%c0_2, %c0_3, %c0_4] : memref<1x768x196xf32, #tpu.memory_space<vmem>>, vector<1x768x196xf32>
    %2 = vector.broadcast %0 : vector<1x768x1xf32> to vector<1x768x196xf32>
    %3 = arith.mulf %2, %1 : vector<1x768x196xf32>
    %c0_5 = arith.constant 0 : index
    %c0_6 = arith.constant 0 : index
    %c0_7 = arith.constant 0 : index
    %4 = vector.load %arg4[%c0_5, %c0_6, %c0_7] : memref<1x768x196xf32, #tpu.memory_space<vmem>>, vector<1x768x196xf32>
    tpu.vector_store %arg4[%c0_5, %c0_6, %c0_7], %3 {strides = array<i32>} : memref<1x768x196xf32, #tpu.memory_space<vmem>>, vector<1x768x196xf32>,
    return
  }
  func.func @transform_0(%arg0: i32, %arg1: i32) -> (i32, i32, i32) {
    %c0_i32 = arith.constant 0 : i32
    %c0_i32_0 = arith.constant 0 : i32
    %c0_i32_1 = arith.constant 0 : i32
    return %c0_i32, %arg1, %c0_i32_0 : i32, i32, i32
  }
  func.func @transform_1(%arg0: i32, %arg1: i32) -> (i32, i32, i32) {
    %c0_i32 = arith.constant 0 : i32
    %c0_i32_0 = arith.constant 0 : i32
    return %arg0, %arg1, %c0_i32 : i32, i32, i32
  }
  func.func @transform_2(%arg0: i32, %arg1: i32) -> (i32, i32, i32) {
    %c0_i32 = arith.constant 0 : i32
    %c0_i32_0 = arith.constant 0 : i32
    return %arg0, %arg1, %c0_i32 : i32, i32, i32
  }
}

</mosaic_0001>

<bundles_post_ra>
// kernel: tpu_custom_call.1
= control target key start
LH: loop header
LB: loop body
LE: loop exit
PB: predicated region body
PF: predicated region fallthrough
CT: control target
= control target key end

     0   :  { %v1171_v0 = vmov 0   ;;  %vm972_vm0 = vcmask 556032   ;;  %s2723_s0 = inlined_call_operand.vmem [shape: f32[1,768,1], index: 0, kind: input, shape index: {}]   ;;  %s2724_s1 = inlined_call_operand.vmem [shape: f32[1,768,196], index: 1, kind: input, shape index: {}]   ;;  %s2725_s2 = inlined_call_operand.vmem [shape: f32[1,768,196], index: 2, kind: output, shape index: {}]  }
   0x1   :  { %1170 = vset.pattern.permute.xlu1 %v1171_v0  ;;  %1169 = vset.pattern.permute.xlu0 %v1171_v0  ;;  %v13_v1 = vld [vmem:[%s2723_s0 + $0x10] sm:$0xff]  ;;  %v11_v2 = vld [vmem:[%s2723_s0] sm:$0xff]  ;;  %v14_v3 = vld [vmem:[%s2723_s0 + $0x18] sm:$0xff] }
   0x2   :  { %311 = vperm.xlu1 %1170, %v13_v1   ;;  %301 = vperm.xlu0 %1169, %v11_v2   ;;  %v12_v4 = vld [vmem:[%s2723_s0 + $0x8] sm:$0xff]  ;;  %v15_v6 = vld [vmem:[%s2723_s0 + $0x20] sm:$0xff]  ;;  %v18_v7 = vld [vmem:[%s2723_s0 + $0x38] sm:$0xff] }
   0x3   :  { %v16_v5 = vld [vmem:[%s2723_s0 + $0x28] sm:$0xff]  ;;  %v17_v8 = vld [vmem:[%s2723_s0 + $0x30] sm:$0xff]  ;;  %v19_v10 = vld [vmem:[%s2723_s0 + $0x40] sm:$0xff] }
   0x4   :  { %v20_v9 = vld [vmem:[%s2723_s0 + $0x48] sm:$0xff]  ;;  %v22_v11 = vld [vmem:[%s2723_s0 + $0x58] sm:$0xff]  ;;  %v21_v12 = vld [vmem:[%s2723_s0 + $0x50] sm:$0xff] }
   0x5   :  { %v24_v13 = vld [vmem:[%s2723_s0 + $0x68] sm:$0xff]  ;;  %v23_v14 = vld [vmem:[%s2723_s0 + $0x60] sm:$0xff]  ;;  %v26_v15 = vld [vmem:[%s2723_s0 + $0x78] sm:$0xff] }
   0x6   :  { %316 = vperm.xlu1 %1170, %v14_v3   ;;  %306 = vperm.xlu0 %1169, %v12_v4   ;;  %v25_v16 = vld [vmem:[%s2723_s0 + $0x70] sm:$0xff]  ;;  %v28_v17 = vld [vmem:[%s2723_s0 + $0x88] sm:$0xff]  ;;  %v27_v18 = vld [vmem:[%s2723_s0 + $0x80] sm:$0xff] }
   0x7   :  { %v30_v19 = vld [vmem:[%s2723_s0 + $0x98] sm:$0xff]  ;;  %v29_v20 = vld [vmem:[%s2723_s0 + $0x90] sm:$0xff]  ;;  %v32_v21 = vld [vmem:[%s2723_s0 + $0xa8] sm:$0xff] }
   0x8   :  { %v31_v22 = vld [vmem:[%s2723_s0 + $0xa0] sm:$0xff]  ;;  %v34_v23 = vld [vmem:[%s2723_s0 + $0xb8] sm:$0xff]  ;;  %v33_v24 = vld [vmem:[%s2723_s0 + $0xb0] sm:$0xff] }
   0x9   :  { %v36_v25 = vld [vmem:[%s2723_s0 + $0xc8] sm:$0xff]  ;;  %v35_v26 = vld [vmem:[%s2723_s0 + $0xc0] sm:$0xff]  ;;  %v38_v27 = vld [vmem:[%s2723_s0 + $0xd8] sm:$0xff] }
   0xa   :  { %326 = vperm.xlu1 %1170, %v16_v5   ;;  %321 = vperm.xlu0 %1169, %v15_v6   ;;  %v37_v28 = vld [vmem:[%s2723_s0 + $0xd0] sm:$0xff]  ;;  %v40_v29 = vld [vmem:[%s2723_s0 + $0xe8] sm:$0xff]  ;;  %v39_v30 = vld [vmem:[%s2723_s0 + $0xe0] sm:$0xff] }
   0xb   :  { %v42_v31 = vld [vmem:[%s2723_s0 + $0xf8] sm:$0xff]  ;;  %v41_v32 = vld [vmem:[%s2723_s0 + $0xf0] sm:$0xff]  ;;  %v44_v33 = vld [vmem:[%s2723_s0 + $0x108] sm:$0xff] }
   0xc   :  { %v43_v34 = vld [vmem:[%s2723_s0 + $0x100] sm:$0xff]  ;;  %v46_v35 = vld [vmem:[%s2723_s0 + $0x118] sm:$0xff]  ;;  %v45_v36 = vld [vmem:[%s2723_s0 + $0x110] sm:$0xff] }
   0xd   :  { %v48_v37 = vld [vmem:[%s2723_s0 + $0x128] sm:$0xff]  ;;  %v47_v38 = vld [vmem:[%s2723_s0 + $0x120] sm:$0xff]  ;;  %v50_v39 = vld [vmem:[%s2723_s0 + $0x138] sm:$0xff] }
   0xe   :  { %336 = vperm.xlu1 %1170, %v18_v7   ;;  %331 = vperm.xlu0 %1169, %v17_v8   ;;  %v49_v40 = vld [vmem:[%s2723_s0 + $0x130] sm:$0xff]  ;;  %v52_v41 = vld [vmem:[%s2723_s0 + $0x148] sm:$0xff]  ;;  %v51_v42 = vld [vmem:[%s2723_s0 + $0x140] sm:$0xff] }
   0xf   :  { %v54_v43 = vld [vmem:[%s2723_s0 + $0x158] sm:$0xff]  ;;  %v53_v44 = vld [vmem:[%s2723_s0 + $0x150] sm:$0xff]  ;;  %v56_v45 = vld [vmem:[%s2723_s0 + $0x168] sm:$0xff] }
  0x10   :  { %v55_v46 = vld [vmem:[%s2723_s0 + $0x160] sm:$0xff]  ;;  %v58_v47 = vld [vmem:[%s2723_s0 + $0x178] sm:$0xff]  ;;  %v57_v48 = vld [vmem:[%s2723_s0 + $0x170] sm:$0xff] }
  0x11   :  { %v60_v49 = vld [vmem:[%s2723_s0 + $0x188] sm:$0xff]  ;;  %v59_v50 = vld [vmem:[%s2723_s0 + $0x180] sm:$0xff]  ;;  %v62_v51 = vld [vmem:[%s2723_s0 + $0x198] sm:$0xff] }
  0x12   :  { %346 = vperm.xlu1 %1170, %v20_v9   ;;  %341 = vperm.xlu0 %1169, %v19_v10   ;;  %v61_v52 = vld [vmem:[%s2723_s0 + $0x190] sm:$0xff]  ;;  %v64_v53 = vld [vmem:[%s2723_s0 + $0x1a8] sm:$0xff]  ;;  %v63_v54 = vld [vmem:[%s2723_s0 + $0x1a0] sm:$0xff] }
  0x13   :  { %v66_v55 = vld [vmem:[%s2723_s0 + $0x1b8] sm:$0xff]  ;;  %v65_v56 = vld [vmem:[%s2723_s0 + $0x1b0] sm:$0xff]  ;;  %v68_v57 = vld [vmem:[%s2723_s0 + $0x1c8] sm:$0xff] }
  0x14   :  { %v67_v58 = vld [vmem:[%s2723_s0 + $0x1c0] sm:$0xff]  ;;  %v70_v59 = vld [vmem:[%s2723_s0 + $0x1d8] sm:$0xff]  ;;  %v69_v60 = vld [vmem:[%s2723_s0 + $0x1d0] sm:$0xff] }
  0x15   :  { %v72_v61 = vld [vmem:[%s2723_s0 + $0x1e8] sm:$0xff]  ;;  %v71_v62 = vld [vmem:[%s2723_s0 + $0x1e0] sm:$0xff]  ;;  %v74_v63 = vld [vmem:[%s2723_s0 + $0x1f8] sm:$0xff] }
  0x16   :  { %356 = vperm.xlu1 %1170, %v22_v11   ;;  %351 = vperm.xlu0 %1169, %v21_v12   ;;  %v73_v0 = vld [vmem:[%s2723_s0 + $0x1f0] sm:$0xff]  ;;  %v111_v1 = vld [vmem:[%s2724_s1 + $0x20] sm:$0xff]  ;;  %v112_v2 = vld [vmem:[%s2724_s1 + $0x28] sm:$0xff] }
  0x17   :  { %v107_v3 = vld [vmem:[%s2724_s1] sm:$0xff]  ;;  %v108_v4 = vld [vmem:[%s2724_s1 + $0x8] sm:$0xff] }
  0x18   :  { %v76_v5 = vld [vmem:[%s2723_s0 + $0x208] sm:$0xff]  ;;  %v75_v6 = vld [vmem:[%s2723_s0 + $0x200] sm:$0xff] }
  0x1a   :  { %366 = vperm.xlu1 %1170, %v24_v13   ;;  %361 = vperm.xlu0 %1169, %v23_v14   ;;  %v113_v13 = vld [vmem:[%s2724_s1 + $0x30] sm:$0xff]  ;;  %v114_v14 = vld [vmem:[%s2724_s1 + $0x38] sm:$0xff] }
  0x1e   :  { %376 = vperm.xlu1 %1170, %v26_v15   ;;  %371 = vperm.xlu0 %1169, %v25_v16   ;;  %v109_v15 = vld [vmem:[%s2724_s1 + $0x10] sm:$0xff]  ;;  %v110_v16 = vld [vmem:[%s2724_s1 + $0x18] sm:$0xff] }
  0x22   :  { %386 = vperm.xlu1 %1170, %v28_v17   ;;  %381 = vperm.xlu0 %1169, %v27_v18   ;;  %v78_v17 = vld [vmem:[%s2723_s0 + $0x218] sm:$0xff]  ;;  %v77_v18 = vld [vmem:[%s2723_s0 + $0x210] sm:$0xff] }
  0x26   :  { %396 = vperm.xlu1 %1170, %v30_v19   ;;  %391 = vperm.xlu0 %1169, %v29_v20  }
  0x2a   :  { %406 = vperm.xlu1 %1170, %v32_v21   ;;  %401 = vperm.xlu0 %1169, %v31_v22  }
  0x2e   :  { %416 = vperm.xlu1 %1170, %v34_v23   ;;  %411 = vperm.xlu0 %1169, %v33_v24  }
  0x32   :  { %426 = vperm.xlu1 %1170, %v36_v25   ;;  %421 = vperm.xlu0 %1169, %v35_v26   ;;  %v117_v25 = vld [vmem:[%s2724_s1 + $0x50] sm:$0xff]  ;;  %v118_v26 = vld [vmem:[%s2724_s1 + $0x58] sm:$0xff] }
  0x36   :  { %436 = vperm.xlu1 %1170, %v38_v27   ;;  %431 = vperm.xlu0 %1169, %v37_v28   ;;  %v115_v27 = vld [vmem:[%s2724_s1 + $0x40] sm:$0xff]  ;;  %v116_v28 = vld [vmem:[%s2724_s1 + $0x48] sm:$0xff] }
  0x3a   :  { %446 = vperm.xlu1 %1170, %v40_v29   ;;  %441 = vperm.xlu0 %1169, %v39_v30   ;;  %v80_v29 = vld [vmem:[%s2723_s0 + $0x228] sm:$0xff]  ;;  %v79_v30 = vld [vmem:[%s2723_s0 + $0x220] sm:$0xff] }
  0x3e   :  { %456 = vperm.xlu1 %1170, %v42_v31   ;;  %451 = vperm.xlu0 %1169, %v41_v32  }
  0x42   :  { %466 = vperm.xlu1 %1170, %v44_v33   ;;  %461 = vperm.xlu0 %1169, %v43_v34  }
  0x46   :  { %476 = vperm.xlu1 %1170, %v46_v35   ;;  %471 = vperm.xlu0 %1169, %v45_v36  }
  0x4a   :  { %486 = vperm.xlu1 %1170, %v48_v37   ;;  %481 = vperm.xlu0 %1169, %v47_v38   ;;  %v121_v37 = vld [vmem:[%s2724_s1 + $0x70] sm:$0xff]  ;;  %v122_v38 = vld [vmem:[%s2724_s1 + $0x78] sm:$0xff] }
  0x4e   :  { %496 = vperm.xlu1 %1170, %v50_v39   ;;  %491 = vperm.xlu0 %1169, %v49_v40   ;;  %v119_v39 = vld [vmem:[%s2724_s1 + $0x60] sm:$0xff]  ;;  %v120_v40 = vld [vmem:[%s2724_s1 + $0x68] sm:$0xff] }
  0x52   :  { %506 = vperm.xlu1 %1170, %v52_v41   ;;  %501 = vperm.xlu0 %1169, %v51_v42   ;;  %v82_v41 = vld [vmem:[%s2723_s0 + $0x238] sm:$0xff]  ;;  %v81_v42 = vld [vmem:[%s2723_s0 + $0x230] sm:$0xff] }
  0x56   :  { %516 = vperm.xlu1 %1170, %v54_v43   ;;  %511 = vperm.xlu0 %1169, %v53_v44  }
  0x5a   :  { %526 = vperm.xlu1 %1170, %v56_v45   ;;  %521 = vperm.xlu0 %1169, %v55_v46  }
  0x5e   :  { %536 = vperm.xlu1 %1170, %v58_v47   ;;  %531 = vperm.xlu0 %1169, %v57_v48  }
  0x62   :  { %546 = vperm.xlu1 %1170, %v60_v49   ;;  %541 = vperm.xlu0 %1169, %v59_v50   ;;  %v125_v49 = vld [vmem:[%s2724_s1 + $0x90] sm:$0xff]  ;;  %v126_v50 = vld [vmem:[%s2724_s1 + $0x98] sm:$0xff] }
  0x66   :  { %556 = vperm.xlu1 %1170, %v62_v51   ;;  %551 = vperm.xlu0 %1169, %v61_v52   ;;  %v123_v51 = vld [vmem:[%s2724_s1 + $0x80] sm:$0xff]  ;;  %v124_v52 = vld [vmem:[%s2724_s1 + $0x88] sm:$0xff] }
  0x6a   :  { %566 = vperm.xlu1 %1170, %v64_v53   ;;  %561 = vperm.xlu0 %1169, %v63_v54   ;;  %v84_v53 = vld [vmem:[%s2723_s0 + $0x248] sm:$0xff]  ;;  %v83_v54 = vld [vmem:[%s2723_s0 + $0x240] sm:$0xff] }
  0x6e   :  { %576 = vperm.xlu1 %1170, %v66_v55   ;;  %571 = vperm.xlu0 %1169, %v65_v56  }
  0x72   :  { %586 = vperm.xlu1 %1170, %v68_v57   ;;  %581 = vperm.xlu0 %1169, %v67_v58  }
  0x76   :  { %596 = vperm.xlu1 %1170, %v70_v59   ;;  %591 = vperm.xlu0 %1169, %v69_v60  }
  0x7a   :  { %606 = vperm.xlu1 %1170, %v72_v61   ;;  %601 = vperm.xlu0 %1169, %v71_v62   ;;  %v129_v61 = vld [vmem:[%s2724_s1 + $0xb0] sm:$0xff]  ;;  %v130_v62 = vld [vmem:[%s2724_s1 + $0xb8] sm:$0xff] }
  0x7e   :  { %616 = vperm.xlu1 %1170, %v74_v63   ;;  %611 = vperm.xlu0 %1169, %v73_v0   ;;  %v127_v63 = vld [vmem:[%s2724_s1 + $0xa0] sm:$0xff]  ;;  %v128_v0 = vld [vmem:[%s2724_s1 + $0xa8] sm:$0xff] }
  0x81   :  { %v312_v7 = vpop.permute.xlu1 %311  ;;  %v302_v8 = vpop.permute.xlu0 %301 }
  0x82   :  { %v783_v9 = vmul.f32 %v312_v7, %v111_v1  ;;  %v784_v10 = vmul.f32 %v312_v7, %v112_v2  ;;  %v779_v11 = vmul.f32 %v302_v8, %v107_v3  ;;  %v780_v12 = vmul.f32 %v302_v8, %v108_v4  ;;  %626 = vperm.xlu1 %1170, %v76_v5   ;;  %v86_v1 = vld [vmem:[%s2723_s0 + $0x258] sm:$0xff]  ;;  %v85_v2 = vld [vmem:[%s2723_s0 + $0x250] sm:$0xff] }
  0x83   :  { %621 = vperm.xlu0 %1169, %v75_v6  }
  0x84   :  { %976 = vst [vmem:[%s2725_s2 + $0x20] sm:$0xff] %v783_v9  ;;  %977 = vst.msk [vmem:[%s2725_s2 + $0x28] sm:$0xff] %vm972_vm0, %v784_v10  ;;  %v133_v9 = vld [vmem:[%s2724_s1 + $0xd0] sm:$0xff]  ;;  %v134_v10 = vld [vmem:[%s2724_s1 + $0xd8] sm:$0xff] }
  0x85   :  { %971 = vst [vmem:[%s2725_s2] sm:$0xff] %v779_v11  ;;  %973 = vst.msk [vmem:[%s2725_s2 + $0x8] sm:$0xff] %vm972_vm0, %v780_v12  ;;  %v317_v19 = vpop.permute.xlu1 %316  ;;  %v307_v20 = vpop.permute.xlu0 %306  ;;  %v131_v11 = vld [vmem:[%s2724_s1 + $0xc0] sm:$0xff]  ;;  %v132_v12 = vld [vmem:[%s2724_s1 + $0xc8] sm:$0xff] }
  0x86   :  { %v785_v21 = vmul.f32 %v317_v19, %v113_v13  ;;  %v786_v22 = vmul.f32 %v317_v19, %v114_v14  ;;  %v781_v23 = vmul.f32 %v307_v20, %v109_v15  ;;  %v782_v24 = vmul.f32 %v307_v20, %v110_v16  ;;  %636 = vperm.xlu1 %1170, %v78_v17   ;;  %v88_v13 = vld [vmem:[%s2723_s0 + $0x268] sm:$0xff]  ;;  %v87_v14 = vld [vmem:[%s2723_s0 + $0x260] sm:$0xff] }
  0x87   :  { %631 = vperm.xlu0 %1169, %v77_v18  }
  0x88   :  { %978 = vst [vmem:[%s2725_s2 + $0x30] sm:$0xff] %v785_v21  ;;  %979 = vst.msk [vmem:[%s2725_s2 + $0x38] sm:$0xff] %vm972_vm0, %v786_v22  ;;  %v137_v21 = vld [vmem:[%s2724_s1 + $0xf0] sm:$0xff]  ;;  %v138_v22 = vld [vmem:[%s2724_s1 + $0xf8] sm:$0xff] }
  0x89   :  { %974 = vst [vmem:[%s2725_s2 + $0x10] sm:$0xff] %v781_v23  ;;  %975 = vst.msk [vmem:[%s2725_s2 + $0x18] sm:$0xff] %vm972_vm0, %v782_v24  ;;  %v327_v31 = vpop.permute.xlu1 %326  ;;  %v322_v32 = vpop.permute.xlu0 %321  ;;  %v135_v23 = vld [vmem:[%s2724_s1 + $0xe0] sm:$0xff]  ;;  %v136_v24 = vld [vmem:[%s2724_s1 + $0xe8] sm:$0xff] }
  0x8a   :  { %v789_v33 = vmul.f32 %v327_v31, %v117_v25  ;;  %v790_v34 = vmul.f32 %v327_v31, %v118_v26  ;;  %v787_v35 = vmul.f32 %v322_v32, %v115_v27  ;;  %v788_v36 = vmul.f32 %v322_v32, %v116_v28  ;;  %646 = vperm.xlu1 %1170, %v80_v29   ;;  %v90_v25 = vld [vmem:[%s2723_s0 + $0x278] sm:$0xff]  ;;  %v89_v26 = vld [vmem:[%s2723_s0 + $0x270] sm:$0xff] }
  0x8b   :  { %641 = vperm.xlu0 %1169, %v79_v30  }
  0x8c   :  { %982 = vst [vmem:[%s2725_s2 + $0x50] sm:$0xff] %v789_v33  ;;  %983 = vst.msk [vmem:[%s2725_s2 + $0x58] sm:$0xff] %vm972_vm0, %v790_v34  ;;  %v141_v33 = vld [vmem:[%s2724_s1 + $0x110] sm:$0xff]  ;;  %v142_v34 = vld [vmem:[%s2724_s1 + $0x118] sm:$0xff] }
  0x8d   :  { %980 = vst [vmem:[%s2725_s2 + $0x40] sm:$0xff] %v787_v35  ;;  %981 = vst.msk [vmem:[%s2725_s2 + $0x48] sm:$0xff] %vm972_vm0, %v788_v36  ;;  %v337_v43 = vpop.permute.xlu1 %336  ;;  %v332_v44 = vpop.permute.xlu0 %331  ;;  %v139_v35 = vld [vmem:[%s2724_s1 + $0x100] sm:$0xff]  ;;  %v140_v36 = vld [vmem:[%s2724_s1 + $0x108] sm:$0xff] }
  0x8e   :  { %v793_v45 = vmul.f32 %v337_v43, %v121_v37  ;;  %v794_v46 = vmul.f32 %v337_v43, %v122_v38  ;;  %v791_v47 = vmul.f32 %v332_v44, %v119_v39  ;;  %v792_v48 = vmul.f32 %v332_v44, %v120_v40  ;;  %656 = vperm.xlu1 %1170, %v82_v41   ;;  %v92_v37 = vld [vmem:[%s2723_s0 + $0x288] sm:$0xff]  ;;  %v91_v38 = vld [vmem:[%s2723_s0 + $0x280] sm:$0xff] }
  0x8f   :  { %651 = vperm.xlu0 %1169, %v81_v42  }
  0x90   :  { %986 = vst [vmem:[%s2725_s2 + $0x70] sm:$0xff] %v793_v45  ;;  %987 = vst.msk [vmem:[%s2725_s2 + $0x78] sm:$0xff] %vm972_vm0, %v794_v46  ;;  %v145_v45 = vld [vmem:[%s2724_s1 + $0x130] sm:$0xff]  ;;  %v146_v46 = vld [vmem:[%s2724_s1 + $0x138] sm:$0xff] }
  0x91   :  { %984 = vst [vmem:[%s2725_s2 + $0x60] sm:$0xff] %v791_v47  ;;  %985 = vst.msk [vmem:[%s2725_s2 + $0x68] sm:$0xff] %vm972_vm0, %v792_v48  ;;  %v347_v55 = vpop.permute.xlu1 %346  ;;  %v342_v56 = vpop.permute.xlu0 %341  ;;  %v143_v47 = vld [vmem:[%s2724_s1 + $0x120] sm:$0xff]  ;;  %v144_v48 = vld [vmem:[%s2724_s1 + $0x128] sm:$0xff] }
  0x92   :  { %v797_v57 = vmul.f32 %v347_v55, %v125_v49  ;;  %v798_v58 = vmul.f32 %v347_v55, %v126_v50  ;;  %v795_v59 = vmul.f32 %v342_v56, %v123_v51  ;;  %v796_v60 = vmul.f32 %v342_v56, %v124_v52  ;;  %666 = vperm.xlu1 %1170, %v84_v53   ;;  %v94_v49 = vld [vmem:[%s2723_s0 + $0x298] sm:$0xff]  ;;  %v93_v50 = vld [vmem:[%s2723_s0 + $0x290] sm:$0xff] }
  0x93   :  { %661 = vperm.xlu0 %1169, %v83_v54  }
  0x94   :  { %990 = vst [vmem:[%s2725_s2 + $0x90] sm:$0xff] %v797_v57  ;;  %991 = vst.msk [vmem:[%s2725_s2 + $0x98] sm:$0xff] %vm972_vm0, %v798_v58  ;;  %v149_v57 = vld [vmem:[%s2724_s1 + $0x150] sm:$0xff]  ;;  %v150_v58 = vld [vmem:[%s2724_s1 + $0x158] sm:$0xff] }
  0x95   :  { %988 = vst [vmem:[%s2725_s2 + $0x80] sm:$0xff] %v795_v59  ;;  %989 = vst.msk [vmem:[%s2725_s2 + $0x88] sm:$0xff] %vm972_vm0, %v796_v60  ;;  %v357_v3 = vpop.permute.xlu1 %356  ;;  %v352_v4 = vpop.permute.xlu0 %351  ;;  %v147_v59 = vld [vmem:[%s2724_s1 + $0x140] sm:$0xff]  ;;  %v148_v60 = vld [vmem:[%s2724_s1 + $0x148] sm:$0xff] }
  0x96   :  { %v801_v5 = vmul.f32 %v357_v3, %v129_v61  ;;  %v802_v6 = vmul.f32 %v357_v3, %v130_v62  ;;  %v799_v7 = vmul.f32 %v352_v4, %v127_v63  ;;  %v800_v8 = vmul.f32 %v352_v4, %v128_v0  ;;  %676 = vperm.xlu1 %1170, %v86_v1   ;;  %v96_v61 = vld [vmem:[%s2723_s0 + $0x2a8] sm:$0xff]  ;;  %v95_v62 = vld [vmem:[%s2723_s0 + $0x2a0] sm:$0xff] }
  0x97   :  { %671 = vperm.xlu0 %1169, %v85_v2  }
  0x98   :  { %994 = vst [vmem:[%s2725_s2 + $0xb0] sm:$0xff] %v801_v5  ;;  %995 = vst.msk [vmem:[%s2725_s2 + $0xb8] sm:$0xff] %vm972_vm0, %v802_v6  ;;  %v153_v5 = vld [vmem:[%s2724_s1 + $0x170] sm:$0xff]  ;;  %v154_v6 = vld [vmem:[%s2724_s1 + $0x178] sm:$0xff] }
  0x99   :  { %992 = vst [vmem:[%s2725_s2 + $0xa0] sm:$0xff] %v799_v7  ;;  %993 = vst.msk [vmem:[%s2725_s2 + $0xa8] sm:$0xff] %vm972_vm0, %v800_v8  ;;  %v367_v15 = vpop.permute.xlu1 %366  ;;  %v362_v16 = vpop.permute.xlu0 %361  ;;  %v151_v7 = vld [vmem:[%s2724_s1 + $0x160] sm:$0xff]  ;;  %v152_v8 = vld [vmem:[%s2724_s1 + $0x168] sm:$0xff] }
  0x9a   :  { %v805_v17 = vmul.f32 %v367_v15, %v133_v9  ;;  %v806_v18 = vmul.f32 %v367_v15, %v134_v10  ;;  %v803_v19 = vmul.f32 %v362_v16, %v131_v11  ;;  %v804_v20 = vmul.f32 %v362_v16, %v132_v12  ;;  %686 = vperm.xlu1 %1170, %v88_v13   ;;  %v98_v9 = vld [vmem:[%s2723_s0 + $0x2b8] sm:$0xff]  ;;  %v97_v10 = vld [vmem:[%s2723_s0 + $0x2b0] sm:$0xff] }
  0x9b   :  { %681 = vperm.xlu0 %1169, %v87_v14  }
  0x9c   :  { %998 = vst [vmem:[%s2725_s2 + $0xd0] sm:$0xff] %v805_v17  ;;  %999 = vst.msk [vmem:[%s2725_s2 + $0xd8] sm:$0xff] %vm972_vm0, %v806_v18  ;;  %v157_v17 = vld [vmem:[%s2724_s1 + $0x190] sm:$0xff]  ;;  %v158_v18 = vld [vmem:[%s2724_s1 + $0x198] sm:$0xff] }
  0x9d   :  { %996 = vst [vmem:[%s2725_s2 + $0xc0] sm:$0xff] %v803_v19  ;;  %997 = vst.msk [vmem:[%s2725_s2 + $0xc8] sm:$0xff] %vm972_vm0, %v804_v20  ;;  %v377_v27 = vpop.permute.xlu1 %376  ;;  %v372_v28 = vpop.permute.xlu0 %371  ;;  %v155_v19 = vld [vmem:[%s2724_s1 + $0x180] sm:$0xff]  ;;  %v156_v20 = vld [vmem:[%s2724_s1 + $0x188] sm:$0xff] }
  0x9e   :  { %v809_v29 = vmul.f32 %v377_v27, %v137_v21  ;;  %v810_v30 = vmul.f32 %v377_v27, %v138_v22  ;;  %v807_v31 = vmul.f32 %v372_v28, %v135_v23  ;;  %v808_v32 = vmul.f32 %v372_v28, %v136_v24  ;;  %696 = vperm.xlu1 %1170, %v90_v25   ;;  %v100_v21 = vld [vmem:[%s2723_s0 + $0x2c8] sm:$0xff]  ;;  %v99_v22 = vld [vmem:[%s2723_s0 + $0x2c0] sm:$0xff] }
  0x9f   :  { %691 = vperm.xlu0 %1169, %v89_v26  }
  0xa0   :  { %1002 = vst [vmem:[%s2725_s2 + $0xf0] sm:$0xff] %v809_v29  ;;  %1003 = vst.msk [vmem:[%s2725_s2 + $0xf8] sm:$0xff] %vm972_vm0, %v810_v30  ;;  %v161_v29 = vld [vmem:[%s2724_s1 + $0x1b0] sm:$0xff]  ;;  %v162_v30 = vld [vmem:[%s2724_s1 + $0x1b8] sm:$0xff] }
  0xa1   :  { %1000 = vst [vmem:[%s2725_s2 + $0xe0] sm:$0xff] %v807_v31  ;;  %1001 = vst.msk [vmem:[%s2725_s2 + $0xe8] sm:$0xff] %vm972_vm0, %v808_v32  ;;  %v387_v39 = vpop.permute.xlu1 %386  ;;  %v382_v40 = vpop.permute.xlu0 %381  ;;  %v159_v31 = vld [vmem:[%s2724_s1 + $0x1a0] sm:$0xff]  ;;  %v160_v32 = vld [vmem:[%s2724_s1 + $0x1a8] sm:$0xff] }
  0xa2   :  { %v813_v41 = vmul.f32 %v387_v39, %v141_v33  ;;  %v814_v42 = vmul.f32 %v387_v39, %v142_v34  ;;  %v811_v43 = vmul.f32 %v382_v40, %v139_v35  ;;  %v812_v44 = vmul.f32 %v382_v40, %v140_v36  ;;  %706 = vperm.xlu1 %1170, %v92_v37   ;;  %v102_v33 = vld [vmem:[%s2723_s0 + $0x2d8] sm:$0xff]  ;;  %v101_v34 = vld [vmem:[%s2723_s0 + $0x2d0] sm:$0xff] }
  0xa3   :  { %701 = vperm.xlu0 %1169, %v91_v38  }
  0xa4   :  { %1006 = vst [vmem:[%s2725_s2 + $0x110] sm:$0xff] %v813_v41  ;;  %1007 = vst.msk [vmem:[%s2725_s2 + $0x118] sm:$0xff] %vm972_vm0, %v814_v42  ;;  %v165_v41 = vld [vmem:[%s2724_s1 + $0x1d0] sm:$0xff]  ;;  %v166_v42 = vld [vmem:[%s2724_s1 + $0x1d8] sm:$0xff] }
  0xa5   :  { %1004 = vst [vmem:[%s2725_s2 + $0x100] sm:$0xff] %v811_v43  ;;  %1005 = vst.msk [vmem:[%s2725_s2 + $0x108] sm:$0xff] %vm972_vm0, %v812_v44  ;;  %v397_v51 = vpop.permute.xlu1 %396  ;;  %v392_v52 = vpop.permute.xlu0 %391  ;;  %v163_v43 = vld [vmem:[%s2724_s1 + $0x1c0] sm:$0xff]  ;;  %v164_v44 = vld [vmem:[%s2724_s1 + $0x1c8] sm:$0xff] }
  0xa6   :  { %v817_v53 = vmul.f32 %v397_v51, %v145_v45  ;;  %v818_v54 = vmul.f32 %v397_v51, %v146_v46  ;;  %v815_v55 = vmul.f32 %v392_v52, %v143_v47  ;;  %v816_v56 = vmul.f32 %v392_v52, %v144_v48  ;;  %716 = vperm.xlu1 %1170, %v94_v49   ;;  %v104_v45 = vld [vmem:[%s2723_s0 + $0x2e8] sm:$0xff]  ;;  %v103_v46 = vld [vmem:[%s2723_s0 + $0x2e0] sm:$0xff] }
  0xa7   :  { %711 = vperm.xlu0 %1169, %v93_v50  }
  0xa8   :  { %1010 = vst [vmem:[%s2725_s2 + $0x130] sm:$0xff] %v817_v53  ;;  %1011 = vst.msk [vmem:[%s2725_s2 + $0x138] sm:$0xff] %vm972_vm0, %v818_v54  ;;  %v169_v53 = vld [vmem:[%s2724_s1 + $0x1f0] sm:$0xff]  ;;  %v170_v54 = vld [vmem:[%s2724_s1 + $0x1f8] sm:$0xff] }
  0xa9   :  { %1008 = vst [vmem:[%s2725_s2 + $0x120] sm:$0xff] %v815_v55  ;;  %1009 = vst.msk [vmem:[%s2725_s2 + $0x128] sm:$0xff] %vm972_vm0, %v816_v56  ;;  %v407_v63 = vpop.permute.xlu1 %406  ;;  %v402_v0 = vpop.permute.xlu0 %401  ;;  %v167_v55 = vld [vmem:[%s2724_s1 + $0x1e0] sm:$0xff]  ;;  %v168_v56 = vld [vmem:[%s2724_s1 + $0x1e8] sm:$0xff] }
  0xaa   :  { %v821_v1 = vmul.f32 %v407_v63, %v149_v57  ;;  %v822_v2 = vmul.f32 %v407_v63, %v150_v58  ;;  %v819_v3 = vmul.f32 %v402_v0, %v147_v59  ;;  %v820_v4 = vmul.f32 %v402_v0, %v148_v60  ;;  %726 = vperm.xlu1 %1170, %v96_v61   ;;  %v106_v57 = vld [vmem:[%s2723_s0 + $0x2f8] sm:$0xff]  ;;  %v105_v58 = vld [vmem:[%s2723_s0 + $0x2f0] sm:$0xff] }
  0xab   :  { %721 = vperm.xlu0 %1169, %v95_v62  }
  0xac   :  { %1014 = vst [vmem:[%s2725_s2 + $0x150] sm:$0xff] %v821_v1  ;;  %1015 = vst.msk [vmem:[%s2725_s2 + $0x158] sm:$0xff] %vm972_vm0, %v822_v2  ;;  %v173_v1 = vld [vmem:[%s2724_s1 + $0x210] sm:$0xff]  ;;  %v174_v2 = vld [vmem:[%s2724_s1 + $0x218] sm:$0xff] }
  0xad   :  { %1012 = vst [vmem:[%s2725_s2 + $0x140] sm:$0xff] %v819_v3  ;;  %1013 = vst.msk [vmem:[%s2725_s2 + $0x148] sm:$0xff] %vm972_vm0, %v820_v4  ;;  %v417_v11 = vpop.permute.xlu1 %416  ;;  %v412_v12 = vpop.permute.xlu0 %411  ;;  %v171_v3 = vld [vmem:[%s2724_s1 + $0x200] sm:$0xff]  ;;  %v172_v4 = vld [vmem:[%s2724_s1 + $0x208] sm:$0xff] }
  0xae   :  { %v825_v13 = vmul.f32 %v417_v11, %v153_v5  ;;  %v826_v14 = vmul.f32 %v417_v11, %v154_v6  ;;  %v823_v15 = vmul.f32 %v412_v12, %v151_v7  ;;  %v824_v16 = vmul.f32 %v412_v12, %v152_v8  ;;  %736 = vperm.xlu1 %1170, %v98_v9   ;;  %v177_v11 = vld [vmem:[%s2724_s1 + $0x230] sm:$0xff]  ;;  %v178_v12 = vld [vmem:[%s2724_s1 + $0x238] sm:$0xff] }
  0xaf   :  { %731 = vperm.xlu0 %1169, %v97_v10  }
  0xb0   :  { %1018 = vst [vmem:[%s2725_s2 + $0x170] sm:$0xff] %v825_v13  ;;  %1019 = vst.msk [vmem:[%s2725_s2 + $0x178] sm:$0xff] %vm972_vm0, %v826_v14  ;;  %v175_v13 = vld [vmem:[%s2724_s1 + $0x220] sm:$0xff]  ;;  %v176_v14 = vld [vmem:[%s2724_s1 + $0x228] sm:$0xff] }
  0xb1   :  { %1016 = vst [vmem:[%s2725_s2 + $0x160] sm:$0xff] %v823_v15  ;;  %1017 = vst.msk [vmem:[%s2725_s2 + $0x168] sm:$0xff] %vm972_vm0, %v824_v16  ;;  %v427_v23 = vpop.permute.xlu1 %426  ;;  %v422_v24 = vpop.permute.xlu0 %421 }
  0xb2   :  { %v829_v25 = vmul.f32 %v427_v23, %v157_v17  ;;  %v830_v26 = vmul.f32 %v427_v23, %v158_v18  ;;  %v827_v27 = vmul.f32 %v422_v24, %v155_v19  ;;  %v828_v28 = vmul.f32 %v422_v24, %v156_v20  ;;  %746 = vperm.xlu1 %1170, %v100_v21   ;;  %v181_v21 = vld [vmem:[%s2724_s1 + $0x250] sm:$0xff]  ;;  %v179_v23 = vld [vmem:[%s2724_s1 + $0x240] sm:$0xff]  ;;  %v180_v24 = vld [vmem:[%s2724_s1 + $0x248] sm:$0xff] }
  0xb3   :  { %741 = vperm.xlu0 %1169, %v99_v22   ;;  %v182_v22 = vld [vmem:[%s2724_s1 + $0x258] sm:$0xff] }
  0xb4   :  { %1022 = vst [vmem:[%s2725_s2 + $0x190] sm:$0xff] %v829_v25  ;;  %1023 = vst.msk [vmem:[%s2725_s2 + $0x198] sm:$0xff] %vm972_vm0, %v830_v26 }
  0xb5   :  { %1020 = vst [vmem:[%s2725_s2 + $0x180] sm:$0xff] %v827_v27  ;;  %1021 = vst.msk [vmem:[%s2725_s2 + $0x188] sm:$0xff] %vm972_vm0, %v828_v28  ;;  %v437_v35 = vpop.permute.xlu1 %436  ;;  %v432_v36 = vpop.permute.xlu0 %431 }
  0xb6   :  { %v833_v37 = vmul.f32 %v437_v35, %v161_v29  ;;  %v834_v38 = vmul.f32 %v437_v35, %v162_v30  ;;  %v831_v39 = vmul.f32 %v432_v36, %v159_v31  ;;  %v832_v40 = vmul.f32 %v432_v36, %v160_v32  ;;  %756 = vperm.xlu1 %1170, %v102_v33   ;;  %v185_v31 = vld [vmem:[%s2724_s1 + $0x270] sm:$0xff]  ;;  %v186_v32 = vld [vmem:[%s2724_s1 + $0x278] sm:$0xff]  ;;  %v183_v33 = vld [vmem:[%s2724_s1 + $0x260] sm:$0xff] }
  0xb7   :  { %751 = vperm.xlu0 %1169, %v101_v34   ;;  %v184_v34 = vld [vmem:[%s2724_s1 + $0x268] sm:$0xff] }
  0xb8   :  { %1026 = vst [vmem:[%s2725_s2 + $0x1b0] sm:$0xff] %v833_v37  ;;  %1027 = vst.msk [vmem:[%s2725_s2 + $0x1b8] sm:$0xff] %vm972_vm0, %v834_v38 }
  0xb9   :  { %1024 = vst [vmem:[%s2725_s2 + $0x1a0] sm:$0xff] %v831_v39  ;;  %1025 = vst.msk [vmem:[%s2725_s2 + $0x1a8] sm:$0xff] %vm972_vm0, %v832_v40  ;;  %v447_v47 = vpop.permute.xlu1 %446  ;;  %v442_v48 = vpop.permute.xlu0 %441 }
  0xba   :  { %v837_v49 = vmul.f32 %v447_v47, %v165_v41  ;;  %v838_v50 = vmul.f32 %v447_v47, %v166_v42  ;;  %v835_v51 = vmul.f32 %v442_v48, %v163_v43  ;;  %v836_v52 = vmul.f32 %v442_v48, %v164_v44  ;;  %766 = vperm.xlu1 %1170, %v104_v45   ;;  %v189_v41 = vld [vmem:[%s2724_s1 + $0x290] sm:$0xff]  ;;  %v190_v42 = vld [vmem:[%s2724_s1 + $0x298] sm:$0xff]  ;;  %v187_v43 = vld [vmem:[%s2724_s1 + $0x280] sm:$0xff] }
  0xbb   :  { %761 = vperm.xlu0 %1169, %v103_v46   ;;  %v188_v44 = vld [vmem:[%s2724_s1 + $0x288] sm:$0xff] }
  0xbc   :  { %1030 = vst [vmem:[%s2725_s2 + $0x1d0] sm:$0xff] %v837_v49  ;;  %1031 = vst.msk [vmem:[%s2725_s2 + $0x1d8] sm:$0xff] %vm972_vm0, %v838_v50 }
  0xbd   :  { %1028 = vst [vmem:[%s2725_s2 + $0x1c0] sm:$0xff] %v835_v51  ;;  %1029 = vst.msk [vmem:[%s2725_s2 + $0x1c8] sm:$0xff] %vm972_vm0, %v836_v52  ;;  %v457_v59 = vpop.permute.xlu1 %456  ;;  %v452_v60 = vpop.permute.xlu0 %451  ;;  %v193_v51 = vld [vmem:[%s2724_s1 + $0x2b0] sm:$0xff]  ;;  %v194_v52 = vld [vmem:[%s2724_s1 + $0x2b8] sm:$0xff] }
  0xbe   :  { %v841_v61 = vmul.f32 %v457_v59, %v169_v53  ;;  %v842_v62 = vmul.f32 %v457_v59, %v170_v54  ;;  %v839_v63 = vmul.f32 %v452_v60, %v167_v55  ;;  %v840_v0 = vmul.f32 %v452_v60, %v168_v56  ;;  %776 = vperm.xlu1 %1170, %v106_v57   ;;  %v191_v53 = vld [vmem:[%s2724_s1 + $0x2a0] sm:$0xff]  ;;  %v192_v54 = vld [vmem:[%s2724_s1 + $0x2a8] sm:$0xff] }
  0xbf   :  { %771 = vperm.xlu0 %1169, %v105_v58  }
  0xc0   :  { %1034 = vst [vmem:[%s2725_s2 + $0x1f0] sm:$0xff] %v841_v61  ;;  %1035 = vst.msk [vmem:[%s2725_s2 + $0x1f8] sm:$0xff] %vm972_vm0, %v842_v62  ;;  %v197_v61 = vld [vmem:[%s2724_s1 + $0x2d0] sm:$0xff]  ;;  %v198_v62 = vld [vmem:[%s2724_s1 + $0x2d8] sm:$0xff] }
  0xc1   :  { %1032 = vst [vmem:[%s2725_s2 + $0x1e0] sm:$0xff] %v839_v63  ;;  %1033 = vst.msk [vmem:[%s2725_s2 + $0x1e8] sm:$0xff] %vm972_vm0, %v840_v0  ;;  %v467_v5 = vpop.permute.xlu1 %466  ;;  %v462_v6 = vpop.permute.xlu0 %461  ;;  %v195_v63 = vld [vmem:[%s2724_s1 + $0x2c0] sm:$0xff]  ;;  %v196_v0 = vld [vmem:[%s2724_s1 + $0x2c8] sm:$0xff] }
  0xc2   :  { %v845_v7 = vmul.f32 %v467_v5, %v173_v1  ;;  %v846_v8 = vmul.f32 %v467_v5, %v174_v2  ;;  %v843_v9 = vmul.f32 %v462_v6, %v171_v3  ;;  %v844_v10 = vmul.f32 %v462_v6, %v172_v4 }
  0xc4   :  { %1038 = vst [vmem:[%s2725_s2 + $0x210] sm:$0xff] %v845_v7  ;;  %1039 = vst.msk [vmem:[%s2725_s2 + $0x218] sm:$0xff] %vm972_vm0, %v846_v8  ;;  %v201_v7 = vld [vmem:[%s2724_s1 + $0x2f0] sm:$0xff]  ;;  %v202_v8 = vld [vmem:[%s2724_s1 + $0x2f8] sm:$0xff] }
  0xc5   :  { %1036 = vst [vmem:[%s2725_s2 + $0x200] sm:$0xff] %v843_v9  ;;  %1037 = vst.msk [vmem:[%s2725_s2 + $0x208] sm:$0xff] %vm972_vm0, %v844_v10  ;;  %v477_v15 = vpop.permute.xlu1 %476  ;;  %v472_v16 = vpop.permute.xlu0 %471  ;;  %v199_v9 = vld [vmem:[%s2724_s1 + $0x2e0] sm:$0xff]  ;;  %v200_v10 = vld [vmem:[%s2724_s1 + $0x2e8] sm:$0xff] }
  0xc6   :  { %v849_v17 = vmul.f32 %v477_v15, %v177_v11  ;;  %v850_v18 = vmul.f32 %v477_v15, %v178_v12  ;;  %v847_v19 = vmul.f32 %v472_v16, %v175_v13  ;;  %v848_v20 = vmul.f32 %v472_v16, %v176_v14 }
  0xc8   :  { %1042 = vst [vmem:[%s2725_s2 + $0x230] sm:$0xff] %v849_v17  ;;  %1043 = vst.msk [vmem:[%s2725_s2 + $0x238] sm:$0xff] %vm972_vm0, %v850_v18  ;;  %v205_v17 = vld [vmem:[%s2724_s1 + $0x310] sm:$0xff]  ;;  %v206_v18 = vld [vmem:[%s2724_s1 + $0x318] sm:$0xff] }
  0xc9   :  { %1040 = vst [vmem:[%s2725_s2 + $0x220] sm:$0xff] %v847_v19  ;;  %1041 = vst.msk [vmem:[%s2725_s2 + $0x228] sm:$0xff] %vm972_vm0, %v848_v20  ;;  %v487_v25 = vpop.permute.xlu1 %486  ;;  %v482_v26 = vpop.permute.xlu0 %481  ;;  %v203_v19 = vld [vmem:[%s2724_s1 + $0x300] sm:$0xff]  ;;  %v204_v20 = vld [vmem:[%s2724_s1 + $0x308] sm:$0xff] }
  0xca   :  { %v853_v27 = vmul.f32 %v487_v25, %v181_v21  ;;  %v854_v28 = vmul.f32 %v487_v25, %v182_v22  ;;  %v851_v29 = vmul.f32 %v482_v26, %v179_v23  ;;  %v852_v30 = vmul.f32 %v482_v26, %v180_v24 }
  0xcc   :  { %1046 = vst [vmem:[%s2725_s2 + $0x250] sm:$0xff] %v853_v27  ;;  %1047 = vst.msk [vmem:[%s2725_s2 + $0x258] sm:$0xff] %vm972_vm0, %v854_v28  ;;  %v209_v27 = vld [vmem:[%s2724_s1 + $0x330] sm:$0xff]  ;;  %v210_v28 = vld [vmem:[%s2724_s1 + $0x338] sm:$0xff] }
  0xcd   :  { %1044 = vst [vmem:[%s2725_s2 + $0x240] sm:$0xff] %v851_v29  ;;  %1045 = vst.msk [vmem:[%s2725_s2 + $0x248] sm:$0xff] %vm972_vm0, %v852_v30  ;;  %v497_v35 = vpop.permute.xlu1 %496  ;;  %v492_v36 = vpop.permute.xlu0 %491  ;;  %v207_v29 = vld [vmem:[%s2724_s1 + $0x320] sm:$0xff]  ;;  %v208_v30 = vld [vmem:[%s2724_s1 + $0x328] sm:$0xff] }
  0xce   :  { %v857_v37 = vmul.f32 %v497_v35, %v185_v31  ;;  %v858_v38 = vmul.f32 %v497_v35, %v186_v32  ;;  %v855_v39 = vmul.f32 %v492_v36, %v183_v33  ;;  %v856_v40 = vmul.f32 %v492_v36, %v184_v34 }
  0xd0   :  { %1050 = vst [vmem:[%s2725_s2 + $0x270] sm:$0xff] %v857_v37  ;;  %1051 = vst.msk [vmem:[%s2725_s2 + $0x278] sm:$0xff] %vm972_vm0, %v858_v38  ;;  %v213_v37 = vld [vmem:[%s2724_s1 + $0x350] sm:$0xff]  ;;  %v214_v38 = vld [vmem:[%s2724_s1 + $0x358] sm:$0xff] }
  0xd1   :  { %1048 = vst [vmem:[%s2725_s2 + $0x260] sm:$0xff] %v855_v39  ;;  %1049 = vst.msk [vmem:[%s2725_s2 + $0x268] sm:$0xff] %vm972_vm0, %v856_v40  ;;  %v507_v45 = vpop.permute.xlu1 %506  ;;  %v502_v46 = vpop.permute.xlu0 %501  ;;  %v211_v39 = vld [vmem:[%s2724_s1 + $0x340] sm:$0xff]  ;;  %v212_v40 = vld [vmem:[%s2724_s1 + $0x348] sm:$0xff] }
  0xd2   :  { %v861_v47 = vmul.f32 %v507_v45, %v189_v41  ;;  %v862_v48 = vmul.f32 %v507_v45, %v190_v42  ;;  %v859_v49 = vmul.f32 %v502_v46, %v187_v43  ;;  %v860_v50 = vmul.f32 %v502_v46, %v188_v44 }
  0xd4   :  { %1054 = vst [vmem:[%s2725_s2 + $0x290] sm:$0xff] %v861_v47  ;;  %1055 = vst.msk [vmem:[%s2725_s2 + $0x298] sm:$0xff] %vm972_vm0, %v862_v48  ;;  %v217_v47 = vld [vmem:[%s2724_s1 + $0x370] sm:$0xff]  ;;  %v218_v48 = vld [vmem:[%s2724_s1 + $0x378] sm:$0xff] }
  0xd5   :  { %1052 = vst [vmem:[%s2725_s2 + $0x280] sm:$0xff] %v859_v49  ;;  %1053 = vst.msk [vmem:[%s2725_s2 + $0x288] sm:$0xff] %vm972_vm0, %v860_v50  ;;  %v517_v55 = vpop.permute.xlu1 %516  ;;  %v512_v56 = vpop.permute.xlu0 %511  ;;  %v215_v49 = vld [vmem:[%s2724_s1 + $0x360] sm:$0xff]  ;;  %v216_v50 = vld [vmem:[%s2724_s1 + $0x368] sm:$0xff] }
  0xd6   :  { %v865_v57 = vmul.f32 %v517_v55, %v193_v51  ;;  %v866_v58 = vmul.f32 %v517_v55, %v194_v52  ;;  %v863_v59 = vmul.f32 %v512_v56, %v191_v53  ;;  %v864_v60 = vmul.f32 %v512_v56, %v192_v54 }
  0xd8   :  { %1058 = vst [vmem:[%s2725_s2 + $0x2b0] sm:$0xff] %v865_v57  ;;  %1059 = vst.msk [vmem:[%s2725_s2 + $0x2b8] sm:$0xff] %vm972_vm0, %v866_v58  ;;  %v221_v57 = vld [vmem:[%s2724_s1 + $0x390] sm:$0xff]  ;;  %v222_v58 = vld [vmem:[%s2724_s1 + $0x398] sm:$0xff] }
  0xd9   :  { %1056 = vst [vmem:[%s2725_s2 + $0x2a0] sm:$0xff] %v863_v59  ;;  %1057 = vst.msk [vmem:[%s2725_s2 + $0x2a8] sm:$0xff] %vm972_vm0, %v864_v60  ;;  %v527_v1 = vpop.permute.xlu1 %526  ;;  %v522_v2 = vpop.permute.xlu0 %521  ;;  %v219_v59 = vld [vmem:[%s2724_s1 + $0x380] sm:$0xff]  ;;  %v220_v60 = vld [vmem:[%s2724_s1 + $0x388] sm:$0xff] }
  0xda   :  { %v869_v3 = vmul.f32 %v527_v1, %v197_v61  ;;  %v870_v4 = vmul.f32 %v527_v1, %v198_v62  ;;  %v867_v5 = vmul.f32 %v522_v2, %v195_v63  ;;  %v868_v6 = vmul.f32 %v522_v2, %v196_v0 }
  0xdc   :  { %1062 = vst [vmem:[%s2725_s2 + $0x2d0] sm:$0xff] %v869_v3  ;;  %1063 = vst.msk [vmem:[%s2725_s2 + $0x2d8] sm:$0xff] %vm972_vm0, %v870_v4  ;;  %v225_v3 = vld [vmem:[%s2724_s1 + $0x3b0] sm:$0xff]  ;;  %v226_v4 = vld [vmem:[%s2724_s1 + $0x3b8] sm:$0xff] }
  0xdd   :  { %1060 = vst [vmem:[%s2725_s2 + $0x2c0] sm:$0xff] %v867_v5  ;;  %1061 = vst.msk [vmem:[%s2725_s2 + $0x2c8] sm:$0xff] %vm972_vm0, %v868_v6  ;;  %v537_v11 = vpop.permute.xlu1 %536  ;;  %v532_v12 = vpop.permute.xlu0 %531  ;;  %v223_v5 = vld [vmem:[%s2724_s1 + $0x3a0] sm:$0xff]  ;;  %v224_v6 = vld [vmem:[%s2724_s1 + $0x3a8] sm:$0xff] }
  0xde   :  { %v873_v13 = vmul.f32 %v537_v11, %v201_v7  ;;  %v874_v14 = vmul.f32 %v537_v11, %v202_v8  ;;  %v871_v15 = vmul.f32 %v532_v12, %v199_v9  ;;  %v872_v16 = vmul.f32 %v532_v12, %v200_v10 }
  0xe0   :  { %1066 = vst [vmem:[%s2725_s2 + $0x2f0] sm:$0xff] %v873_v13  ;;  %1067 = vst.msk [vmem:[%s2725_s2 + $0x2f8] sm:$0xff] %vm972_vm0, %v874_v14  ;;  %v229_v13 = vld [vmem:[%s2724_s1 + $0x3d0] sm:$0xff]  ;;  %v230_v14 = vld [vmem:[%s2724_s1 + $0x3d8] sm:$0xff] }
  0xe1   :  { %1064 = vst [vmem:[%s2725_s2 + $0x2e0] sm:$0xff] %v871_v15  ;;  %1065 = vst.msk [vmem:[%s2725_s2 + $0x2e8] sm:$0xff] %vm972_vm0, %v872_v16  ;;  %v547_v21 = vpop.permute.xlu1 %546  ;;  %v542_v22 = vpop.permute.xlu0 %541  ;;  %v227_v15 = vld [vmem:[%s2724_s1 + $0x3c0] sm:$0xff]  ;;  %v228_v16 = vld [vmem:[%s2724_s1 + $0x3c8] sm:$0xff] }
  0xe2   :  { %v877_v23 = vmul.f32 %v547_v21, %v205_v17  ;;  %v878_v24 = vmul.f32 %v547_v21, %v206_v18  ;;  %v875_v25 = vmul.f32 %v542_v22, %v203_v19  ;;  %v876_v26 = vmul.f32 %v542_v22, %v204_v20 }
  0xe4   :  { %1070 = vst [vmem:[%s2725_s2 + $0x310] sm:$0xff] %v877_v23  ;;  %1071 = vst.msk [vmem:[%s2725_s2 + $0x318] sm:$0xff] %vm972_vm0, %v878_v24  ;;  %v233_v23 = vld [vmem:[%s2724_s1 + $0x3f0] sm:$0xff]  ;;  %v234_v24 = vld [vmem:[%s2724_s1 + $0x3f8] sm:$0xff] }
  0xe5   :  { %1068 = vst [vmem:[%s2725_s2 + $0x300] sm:$0xff] %v875_v25  ;;  %1069 = vst.msk [vmem:[%s2725_s2 + $0x308] sm:$0xff] %vm972_vm0, %v876_v26  ;;  %v557_v31 = vpop.permute.xlu1 %556  ;;  %v552_v32 = vpop.permute.xlu0 %551  ;;  %v231_v25 = vld [vmem:[%s2724_s1 + $0x3e0] sm:$0xff]  ;;  %v232_v26 = vld [vmem:[%s2724_s1 + $0x3e8] sm:$0xff] }
  0xe6   :  { %v881_v33 = vmul.f32 %v557_v31, %v209_v27  ;;  %v882_v34 = vmul.f32 %v557_v31, %v210_v28  ;;  %v879_v35 = vmul.f32 %v552_v32, %v207_v29  ;;  %v880_v36 = vmul.f32 %v552_v32, %v208_v30 }
  0xe8   :  { %1074 = vst [vmem:[%s2725_s2 + $0x330] sm:$0xff] %v881_v33  ;;  %1075 = vst.msk [vmem:[%s2725_s2 + $0x338] sm:$0xff] %vm972_vm0, %v882_v34  ;;  %v237_v33 = vld [vmem:[%s2724_s1 + $0x410] sm:$0xff]  ;;  %v238_v34 = vld [vmem:[%s2724_s1 + $0x418] sm:$0xff] }
  0xe9   :  { %1072 = vst [vmem:[%s2725_s2 + $0x320] sm:$0xff] %v879_v35  ;;  %1073 = vst.msk [vmem:[%s2725_s2 + $0x328] sm:$0xff] %vm972_vm0, %v880_v36  ;;  %v567_v41 = vpop.permute.xlu1 %566  ;;  %v562_v42 = vpop.permute.xlu0 %561  ;;  %v235_v35 = vld [vmem:[%s2724_s1 + $0x400] sm:$0xff]  ;;  %v236_v36 = vld [vmem:[%s2724_s1 + $0x408] sm:$0xff] }
  0xea   :  { %v885_v43 = vmul.f32 %v567_v41, %v213_v37  ;;  %v886_v44 = vmul.f32 %v567_v41, %v214_v38  ;;  %v883_v45 = vmul.f32 %v562_v42, %v211_v39  ;;  %v884_v46 = vmul.f32 %v562_v42, %v212_v40 }
  0xec   :  { %1078 = vst [vmem:[%s2725_s2 + $0x350] sm:$0xff] %v885_v43  ;;  %1079 = vst.msk [vmem:[%s2725_s2 + $0x358] sm:$0xff] %vm972_vm0, %v886_v44  ;;  %v241_v43 = vld [vmem:[%s2724_s1 + $0x430] sm:$0xff]  ;;  %v242_v44 = vld [vmem:[%s2724_s1 + $0x438] sm:$0xff] }
  0xed   :  { %1076 = vst [vmem:[%s2725_s2 + $0x340] sm:$0xff] %v883_v45  ;;  %1077 = vst.msk [vmem:[%s2725_s2 + $0x348] sm:$0xff] %vm972_vm0, %v884_v46  ;;  %v577_v51 = vpop.permute.xlu1 %576  ;;  %v572_v52 = vpop.permute.xlu0 %571  ;;  %v239_v45 = vld [vmem:[%s2724_s1 + $0x420] sm:$0xff]  ;;  %v240_v46 = vld [vmem:[%s2724_s1 + $0x428] sm:$0xff] }
  0xee   :  { %v889_v53 = vmul.f32 %v577_v51, %v217_v47  ;;  %v890_v54 = vmul.f32 %v577_v51, %v218_v48  ;;  %v887_v55 = vmul.f32 %v572_v52, %v215_v49  ;;  %v888_v56 = vmul.f32 %v572_v52, %v216_v50 }
  0xf0   :  { %1082 = vst [vmem:[%s2725_s2 + $0x370] sm:$0xff] %v889_v53  ;;  %1083 = vst.msk [vmem:[%s2725_s2 + $0x378] sm:$0xff] %vm972_vm0, %v890_v54  ;;  %v245_v53 = vld [vmem:[%s2724_s1 + $0x450] sm:$0xff]  ;;  %v246_v54 = vld [vmem:[%s2724_s1 + $0x458] sm:$0xff] }
  0xf1   :  { %1080 = vst [vmem:[%s2725_s2 + $0x360] sm:$0xff] %v887_v55  ;;  %1081 = vst.msk [vmem:[%s2725_s2 + $0x368] sm:$0xff] %vm972_vm0, %v888_v56  ;;  %v587_v61 = vpop.permute.xlu1 %586  ;;  %v582_v62 = vpop.permute.xlu0 %581  ;;  %v243_v55 = vld [vmem:[%s2724_s1 + $0x440] sm:$0xff]  ;;  %v244_v56 = vld [vmem:[%s2724_s1 + $0x448] sm:$0xff] }
  0xf2   :  { %v893_v63 = vmul.f32 %v587_v61, %v221_v57  ;;  %v894_v0 = vmul.f32 %v587_v61, %v222_v58  ;;  %v891_v1 = vmul.f32 %v582_v62, %v219_v59  ;;  %v892_v2 = vmul.f32 %v582_v62, %v220_v60 }
  0xf4   :  { %1086 = vst [vmem:[%s2725_s2 + $0x390] sm:$0xff] %v893_v63  ;;  %1087 = vst.msk [vmem:[%s2725_s2 + $0x398] sm:$0xff] %vm972_vm0, %v894_v0  ;;  %v249_v63 = vld [vmem:[%s2724_s1 + $0x470] sm:$0xff]  ;;  %v250_v0 = vld [vmem:[%s2724_s1 + $0x478] sm:$0xff] }
  0xf5   :  { %1084 = vst [vmem:[%s2725_s2 + $0x380] sm:$0xff] %v891_v1  ;;  %1085 = vst.msk [vmem:[%s2725_s2 + $0x388] sm:$0xff] %vm972_vm0, %v892_v2  ;;  %v597_v7 = vpop.permute.xlu1 %596  ;;  %v592_v8 = vpop.permute.xlu0 %591  ;;  %v247_v1 = vld [vmem:[%s2724_s1 + $0x460] sm:$0xff]  ;;  %v248_v2 = vld [vmem:[%s2724_s1 + $0x468] sm:$0xff] }
  0xf6   :  { %v897_v9 = vmul.f32 %v597_v7, %v225_v3  ;;  %v898_v10 = vmul.f32 %v597_v7, %v226_v4  ;;  %v895_v11 = vmul.f32 %v592_v8, %v223_v5  ;;  %v896_v12 = vmul.f32 %v592_v8, %v224_v6 }
  0xf8   :  { %1090 = vst [vmem:[%s2725_s2 + $0x3b0] sm:$0xff] %v897_v9  ;;  %1091 = vst.msk [vmem:[%s2725_s2 + $0x3b8] sm:$0xff] %vm972_vm0, %v898_v10  ;;  %v253_v9 = vld [vmem:[%s2724_s1 + $0x490] sm:$0xff]  ;;  %v254_v10 = vld [vmem:[%s2724_s1 + $0x498] sm:$0xff] }
  0xf9   :  { %1088 = vst [vmem:[%s2725_s2 + $0x3a0] sm:$0xff] %v895_v11  ;;  %1089 = vst.msk [vmem:[%s2725_s2 + $0x3a8] sm:$0xff] %vm972_vm0, %v896_v12  ;;  %v607_v17 = vpop.permute.xlu1 %606  ;;  %v602_v18 = vpop.permute.xlu0 %601  ;;  %v251_v11 = vld [vmem:[%s2724_s1 + $0x480] sm:$0xff]  ;;  %v252_v12 = vld [vmem:[%s2724_s1 + $0x488] sm:$0xff] }
  0xfa   :  { %v901_v19 = vmul.f32 %v607_v17, %v229_v13  ;;  %v902_v20 = vmul.f32 %v607_v17, %v230_v14  ;;  %v899_v21 = vmul.f32 %v602_v18, %v227_v15  ;;  %v900_v22 = vmul.f32 %v602_v18, %v228_v16 }
  0xfc   :  { %1094 = vst [vmem:[%s2725_s2 + $0x3d0] sm:$0xff] %v901_v19  ;;  %1095 = vst.msk [vmem:[%s2725_s2 + $0x3d8] sm:$0xff] %vm972_vm0, %v902_v20  ;;  %v257_v19 = vld [vmem:[%s2724_s1 + $0x4b0] sm:$0xff]  ;;  %v258_v20 = vld [vmem:[%s2724_s1 + $0x4b8] sm:$0xff] }
  0xfd   :  { %1092 = vst [vmem:[%s2725_s2 + $0x3c0] sm:$0xff] %v899_v21  ;;  %1093 = vst.msk [vmem:[%s2725_s2 + $0x3c8] sm:$0xff] %vm972_vm0, %v900_v22  ;;  %v617_v27 = vpop.permute.xlu1 %616  ;;  %v612_v28 = vpop.permute.xlu0 %611  ;;  %v255_v21 = vld [vmem:[%s2724_s1 + $0x4a0] sm:$0xff]  ;;  %v256_v22 = vld [vmem:[%s2724_s1 + $0x4a8] sm:$0xff] }
  0xfe   :  { %v905_v29 = vmul.f32 %v617_v27, %v233_v23  ;;  %v906_v30 = vmul.f32 %v617_v27, %v234_v24  ;;  %v903_v31 = vmul.f32 %v612_v28, %v231_v25  ;;  %v904_v32 = vmul.f32 %v612_v28, %v232_v26 }
 0x100   :  { %1098 = vst [vmem:[%s2725_s2 + $0x3f0] sm:$0xff] %v905_v29  ;;  %1099 = vst.msk [vmem:[%s2725_s2 + $0x3f8] sm:$0xff] %vm972_vm0, %v906_v30  ;;  %v261_v29 = vld [vmem:[%s2724_s1 + $0x4d0] sm:$0xff]  ;;  %v262_v30 = vld [vmem:[%s2724_s1 + $0x4d8] sm:$0xff] }
 0x101   :  { %1096 = vst [vmem:[%s2725_s2 + $0x3e0] sm:$0xff] %v903_v31  ;;  %1097 = vst.msk [vmem:[%s2725_s2 + $0x3e8] sm:$0xff] %vm972_vm0, %v904_v32  ;;  %v627_v37 = vpop.permute.xlu1 %626  ;;  %v259_v31 = vld [vmem:[%s2724_s1 + $0x4c0] sm:$0xff]  ;;  %v260_v32 = vld [vmem:[%s2724_s1 + $0x4c8] sm:$0xff] }
 0x102   :  { %v909_v38 = vmul.f32 %v627_v37, %v237_v33  ;;  %v910_v39 = vmul.f32 %v627_v37, %v238_v34  ;;  %v622_v40 = vpop.permute.xlu0 %621 }
 0x103   :  { %v907_v41 = vmul.f32 %v622_v40, %v235_v35  ;;  %v908_v42 = vmul.f32 %v622_v40, %v236_v36  ;;  %v266_v40 = vld [vmem:[%s2724_s1 + $0x4f8] sm:$0xff] }
 0x104   :  { %1102 = vst [vmem:[%s2725_s2 + $0x410] sm:$0xff] %v909_v38  ;;  %1103 = vst.msk [vmem:[%s2725_s2 + $0x418] sm:$0xff] %vm972_vm0, %v910_v39  ;;  %v265_v39 = vld [vmem:[%s2724_s1 + $0x4f0] sm:$0xff] }
 0x105   :  { %1100 = vst [vmem:[%s2725_s2 + $0x400] sm:$0xff] %v907_v41  ;;  %1101 = vst.msk [vmem:[%s2725_s2 + $0x408] sm:$0xff] %vm972_vm0, %v908_v42  ;;  %v637_v47 = vpop.permute.xlu1 %636  ;;  %v263_v41 = vld [vmem:[%s2724_s1 + $0x4e0] sm:$0xff]  ;;  %v264_v42 = vld [vmem:[%s2724_s1 + $0x4e8] sm:$0xff] }
 0x106   :  { %v913_v48 = vmul.f32 %v637_v47, %v241_v43  ;;  %v914_v49 = vmul.f32 %v637_v47, %v242_v44  ;;  %v632_v50 = vpop.permute.xlu0 %631 }
 0x107   :  { %v911_v51 = vmul.f32 %v632_v50, %v239_v45  ;;  %v912_v52 = vmul.f32 %v632_v50, %v240_v46  ;;  %v270_v50 = vld [vmem:[%s2724_s1 + $0x518] sm:$0xff] }
 0x108   :  { %1106 = vst [vmem:[%s2725_s2 + $0x430] sm:$0xff] %v913_v48  ;;  %1107 = vst.msk [vmem:[%s2725_s2 + $0x438] sm:$0xff] %vm972_vm0, %v914_v49  ;;  %v269_v49 = vld [vmem:[%s2724_s1 + $0x510] sm:$0xff] }
 0x109   :  { %1104 = vst [vmem:[%s2725_s2 + $0x420] sm:$0xff] %v911_v51  ;;  %1105 = vst.msk [vmem:[%s2725_s2 + $0x428] sm:$0xff] %vm972_vm0, %v912_v52  ;;  %v647_v57 = vpop.permute.xlu1 %646  ;;  %v267_v51 = vld [vmem:[%s2724_s1 + $0x500] sm:$0xff]  ;;  %v268_v52 = vld [vmem:[%s2724_s1 + $0x508] sm:$0xff] }
 0x10a   :  { %v917_v58 = vmul.f32 %v647_v57, %v245_v53  ;;  %v918_v59 = vmul.f32 %v647_v57, %v246_v54  ;;  %v642_v60 = vpop.permute.xlu0 %641 }
 0x10b   :  { %v915_v61 = vmul.f32 %v642_v60, %v243_v55  ;;  %v916_v62 = vmul.f32 %v642_v60, %v244_v56  ;;  %v274_v60 = vld [vmem:[%s2724_s1 + $0x538] sm:$0xff] }
 0x10c   :  { %1110 = vst [vmem:[%s2725_s2 + $0x450] sm:$0xff] %v917_v58  ;;  %1111 = vst.msk [vmem:[%s2725_s2 + $0x458] sm:$0xff] %vm972_vm0, %v918_v59  ;;  %v273_v59 = vld [vmem:[%s2724_s1 + $0x530] sm:$0xff] }
 0x10d   :  { %1108 = vst [vmem:[%s2725_s2 + $0x440] sm:$0xff] %v915_v61  ;;  %1109 = vst.msk [vmem:[%s2725_s2 + $0x448] sm:$0xff] %vm972_vm0, %v916_v62  ;;  %v657_v3 = vpop.permute.xlu1 %656  ;;  %v271_v61 = vld [vmem:[%s2724_s1 + $0x520] sm:$0xff]  ;;  %v272_v62 = vld [vmem:[%s2724_s1 + $0x528] sm:$0xff] }
 0x10e   :  { %v921_v4 = vmul.f32 %v657_v3, %v249_v63  ;;  %v922_v5 = vmul.f32 %v657_v3, %v250_v0  ;;  %v652_v6 = vpop.permute.xlu0 %651 }
 0x10f   :  { %v919_v7 = vmul.f32 %v652_v6, %v247_v1  ;;  %v920_v8 = vmul.f32 %v652_v6, %v248_v2  ;;  %v278_v6 = vld [vmem:[%s2724_s1 + $0x558] sm:$0xff] }
 0x110   :  { %1114 = vst [vmem:[%s2725_s2 + $0x470] sm:$0xff] %v921_v4  ;;  %1115 = vst.msk [vmem:[%s2725_s2 + $0x478] sm:$0xff] %vm972_vm0, %v922_v5  ;;  %v277_v5 = vld [vmem:[%s2724_s1 + $0x550] sm:$0xff] }
 0x111   :  { %1112 = vst [vmem:[%s2725_s2 + $0x460] sm:$0xff] %v919_v7  ;;  %1113 = vst.msk [vmem:[%s2725_s2 + $0x468] sm:$0xff] %vm972_vm0, %v920_v8  ;;  %v667_v13 = vpop.permute.xlu1 %666  ;;  %v275_v7 = vld [vmem:[%s2724_s1 + $0x540] sm:$0xff]  ;;  %v276_v8 = vld [vmem:[%s2724_s1 + $0x548] sm:$0xff] }
 0x112   :  { %v925_v14 = vmul.f32 %v667_v13, %v253_v9  ;;  %v926_v15 = vmul.f32 %v667_v13, %v254_v10  ;;  %v662_v16 = vpop.permute.xlu0 %661 }
 0x113   :  { %v923_v17 = vmul.f32 %v662_v16, %v251_v11  ;;  %v924_v18 = vmul.f32 %v662_v16, %v252_v12  ;;  %v282_v16 = vld [vmem:[%s2724_s1 + $0x578] sm:$0xff] }
 0x114   :  { %1118 = vst [vmem:[%s2725_s2 + $0x490] sm:$0xff] %v925_v14  ;;  %1119 = vst.msk [vmem:[%s2725_s2 + $0x498] sm:$0xff] %vm972_vm0, %v926_v15  ;;  %v281_v15 = vld [vmem:[%s2724_s1 + $0x570] sm:$0xff] }
 0x115   :  { %1116 = vst [vmem:[%s2725_s2 + $0x480] sm:$0xff] %v923_v17  ;;  %1117 = vst.msk [vmem:[%s2725_s2 + $0x488] sm:$0xff] %vm972_vm0, %v924_v18  ;;  %v677_v23 = vpop.permute.xlu1 %676  ;;  %v279_v17 = vld [vmem:[%s2724_s1 + $0x560] sm:$0xff]  ;;  %v280_v18 = vld [vmem:[%s2724_s1 + $0x568] sm:$0xff] }
 0x116   :  { %v929_v24 = vmul.f32 %v677_v23, %v257_v19  ;;  %v930_v25 = vmul.f32 %v677_v23, %v258_v20  ;;  %v672_v26 = vpop.permute.xlu0 %671 }
 0x117   :  { %v927_v27 = vmul.f32 %v672_v26, %v255_v21  ;;  %v928_v28 = vmul.f32 %v672_v26, %v256_v22  ;;  %v286_v26 = vld [vmem:[%s2724_s1 + $0x598] sm:$0xff] }
 0x118   :  { %1122 = vst [vmem:[%s2725_s2 + $0x4b0] sm:$0xff] %v929_v24  ;;  %1123 = vst.msk [vmem:[%s2725_s2 + $0x4b8] sm:$0xff] %vm972_vm0, %v930_v25  ;;  %v285_v25 = vld [vmem:[%s2724_s1 + $0x590] sm:$0xff] }
 0x119   :  { %1120 = vst [vmem:[%s2725_s2 + $0x4a0] sm:$0xff] %v927_v27  ;;  %1121 = vst.msk [vmem:[%s2725_s2 + $0x4a8] sm:$0xff] %vm972_vm0, %v928_v28  ;;  %v687_v33 = vpop.permute.xlu1 %686  ;;  %v283_v27 = vld [vmem:[%s2724_s1 + $0x580] sm:$0xff]  ;;  %v284_v28 = vld [vmem:[%s2724_s1 + $0x588] sm:$0xff] }
 0x11a   :  { %v933_v34 = vmul.f32 %v687_v33, %v261_v29  ;;  %v934_v35 = vmul.f32 %v687_v33, %v262_v30  ;;  %v682_v36 = vpop.permute.xlu0 %681 }
 0x11b   :  { %v931_v37 = vmul.f32 %v682_v36, %v259_v31  ;;  %v932_v38 = vmul.f32 %v682_v36, %v260_v32  ;;  %v290_v36 = vld [vmem:[%s2724_s1 + $0x5b8] sm:$0xff] }
 0x11c   :  { %1126 = vst [vmem:[%s2725_s2 + $0x4d0] sm:$0xff] %v933_v34  ;;  %1127 = vst.msk [vmem:[%s2725_s2 + $0x4d8] sm:$0xff] %vm972_vm0, %v934_v35  ;;  %v289_v35 = vld [vmem:[%s2724_s1 + $0x5b0] sm:$0xff] }
 0x11d   :  { %1124 = vst [vmem:[%s2725_s2 + $0x4c0] sm:$0xff] %v931_v37  ;;  %1125 = vst.msk [vmem:[%s2725_s2 + $0x4c8] sm:$0xff] %vm972_vm0, %v932_v38  ;;  %v697_v43 = vpop.permute.xlu1 %696  ;;  %v287_v37 = vld [vmem:[%s2724_s1 + $0x5a0] sm:$0xff]  ;;  %v288_v38 = vld [vmem:[%s2724_s1 + $0x5a8] sm:$0xff] }
 0x11e   :  { %v937_v44 = vmul.f32 %v697_v43, %v265_v39  ;;  %v938_v45 = vmul.f32 %v697_v43, %v266_v40  ;;  %v692_v46 = vpop.permute.xlu0 %691 }
 0x11f   :  { %v935_v47 = vmul.f32 %v692_v46, %v263_v41  ;;  %v936_v48 = vmul.f32 %v692_v46, %v264_v42  ;;  %v294_v46 = vld [vmem:[%s2724_s1 + $0x5d8] sm:$0xff] }
 0x120   :  { %1130 = vst [vmem:[%s2725_s2 + $0x4f0] sm:$0xff] %v937_v44  ;;  %1131 = vst.msk [vmem:[%s2725_s2 + $0x4f8] sm:$0xff] %vm972_vm0, %v938_v45  ;;  %v293_v45 = vld [vmem:[%s2724_s1 + $0x5d0] sm:$0xff] }
 0x121   :  { %1128 = vst [vmem:[%s2725_s2 + $0x4e0] sm:$0xff] %v935_v47  ;;  %1129 = vst.msk [vmem:[%s2725_s2 + $0x4e8] sm:$0xff] %vm972_vm0, %v936_v48  ;;  %v707_v53 = vpop.permute.xlu1 %706  ;;  %v291_v47 = vld [vmem:[%s2724_s1 + $0x5c0] sm:$0xff]  ;;  %v292_v48 = vld [vmem:[%s2724_s1 + $0x5c8] sm:$0xff] }
 0x122   :  { %v941_v54 = vmul.f32 %v707_v53, %v269_v49  ;;  %v942_v55 = vmul.f32 %v707_v53, %v270_v50  ;;  %v702_v56 = vpop.permute.xlu0 %701 }
 0x123   :  { %v939_v57 = vmul.f32 %v702_v56, %v267_v51  ;;  %v940_v58 = vmul.f32 %v702_v56, %v268_v52  ;;  %v298_v56 = vld [vmem:[%s2724_s1 + $0x5f8] sm:$0xff] }
 0x124   :  { %1134 = vst [vmem:[%s2725_s2 + $0x510] sm:$0xff] %v941_v54  ;;  %1135 = vst.msk [vmem:[%s2725_s2 + $0x518] sm:$0xff] %vm972_vm0, %v942_v55  ;;  %v297_v55 = vld [vmem:[%s2724_s1 + $0x5f0] sm:$0xff] }
 0x125   :  { %1132 = vst [vmem:[%s2725_s2 + $0x500] sm:$0xff] %v939_v57  ;;  %1133 = vst.msk [vmem:[%s2725_s2 + $0x508] sm:$0xff] %vm972_vm0, %v940_v58  ;;  %v717_v63 = vpop.permute.xlu1 %716  ;;  %v295_v57 = vld [vmem:[%s2724_s1 + $0x5e0] sm:$0xff]  ;;  %v296_v58 = vld [vmem:[%s2724_s1 + $0x5e8] sm:$0xff] }
 0x126   :  { %v945_v0 = vmul.f32 %v717_v63, %v273_v59  ;;  %v946_v1 = vmul.f32 %v717_v63, %v274_v60  ;;  %v712_v2 = vpop.permute.xlu0 %711 }
 0x127   :  { %v943_v3 = vmul.f32 %v712_v2, %v271_v61  ;;  %v944_v4 = vmul.f32 %v712_v2, %v272_v62 }
 0x128   :  { %1138 = vst [vmem:[%s2725_s2 + $0x530] sm:$0xff] %v945_v0  ;;  %1139 = vst.msk [vmem:[%s2725_s2 + $0x538] sm:$0xff] %vm972_vm0, %v946_v1 }
 0x129   :  { %1136 = vst [vmem:[%s2725_s2 + $0x520] sm:$0xff] %v943_v3  ;;  %1137 = vst.msk [vmem:[%s2725_s2 + $0x528] sm:$0xff] %vm972_vm0, %v944_v4  ;;  %v727_v9 = vpop.permute.xlu1 %726 }
 0x12a   :  { %v949_v10 = vmul.f32 %v727_v9, %v277_v5  ;;  %v950_v11 = vmul.f32 %v727_v9, %v278_v6  ;;  %v722_v12 = vpop.permute.xlu0 %721 }
 0x12b   :  { %v947_v13 = vmul.f32 %v722_v12, %v275_v7  ;;  %v948_v14 = vmul.f32 %v722_v12, %v276_v8 }
 0x12c   :  { %1142 = vst [vmem:[%s2725_s2 + $0x550] sm:$0xff] %v949_v10  ;;  %1143 = vst.msk [vmem:[%s2725_s2 + $0x558] sm:$0xff] %vm972_vm0, %v950_v11 }
 0x12d   :  { %1140 = vst [vmem:[%s2725_s2 + $0x540] sm:$0xff] %v947_v13  ;;  %1141 = vst.msk [vmem:[%s2725_s2 + $0x548] sm:$0xff] %vm972_vm0, %v948_v14  ;;  %v737_v19 = vpop.permute.xlu1 %736 }
 0x12e   :  { %v953_v20 = vmul.f32 %v737_v19, %v281_v15  ;;  %v954_v21 = vmul.f32 %v737_v19, %v282_v16  ;;  %v732_v22 = vpop.permute.xlu0 %731 }
 0x12f   :  { %v951_v23 = vmul.f32 %v732_v22, %v279_v17  ;;  %v952_v24 = vmul.f32 %v732_v22, %v280_v18 }
 0x130   :  { %1146 = vst [vmem:[%s2725_s2 + $0x570] sm:$0xff] %v953_v20  ;;  %1147 = vst.msk [vmem:[%s2725_s2 + $0x578] sm:$0xff] %vm972_vm0, %v954_v21 }
 0x131   :  { %1144 = vst [vmem:[%s2725_s2 + $0x560] sm:$0xff] %v951_v23  ;;  %1145 = vst.msk [vmem:[%s2725_s2 + $0x568] sm:$0xff] %vm972_vm0, %v952_v24  ;;  %v747_v29 = vpop.permute.xlu1 %746 }
 0x132   :  { %v957_v30 = vmul.f32 %v747_v29, %v285_v25  ;;  %v958_v31 = vmul.f32 %v747_v29, %v286_v26  ;;  %v742_v32 = vpop.permute.xlu0 %741 }
 0x133   :  { %v955_v33 = vmul.f32 %v742_v32, %v283_v27  ;;  %v956_v34 = vmul.f32 %v742_v32, %v284_v28 }
 0x134   :  { %1150 = vst [vmem:[%s2725_s2 + $0x590] sm:$0xff] %v957_v30  ;;  %1151 = vst.msk [vmem:[%s2725_s2 + $0x598] sm:$0xff] %vm972_vm0, %v958_v31 }
 0x135   :  { %1148 = vst [vmem:[%s2725_s2 + $0x580] sm:$0xff] %v955_v33  ;;  %1149 = vst.msk [vmem:[%s2725_s2 + $0x588] sm:$0xff] %vm972_vm0, %v956_v34  ;;  %v757_v39 = vpop.permute.xlu1 %756 }
 0x136   :  { %v961_v40 = vmul.f32 %v757_v39, %v289_v35  ;;  %v962_v41 = vmul.f32 %v757_v39, %v290_v36  ;;  %v752_v42 = vpop.permute.xlu0 %751 }
 0x137   :  { %v959_v43 = vmul.f32 %v752_v42, %v287_v37  ;;  %v960_v44 = vmul.f32 %v752_v42, %v288_v38 }
 0x138   :  { %1154 = vst [vmem:[%s2725_s2 + $0x5b0] sm:$0xff] %v961_v40  ;;  %1155 = vst.msk [vmem:[%s2725_s2 + $0x5b8] sm:$0xff] %vm972_vm0, %v962_v41 }
 0x139   :  { %1152 = vst [vmem:[%s2725_s2 + $0x5a0] sm:$0xff] %v959_v43  ;;  %1153 = vst.msk [vmem:[%s2725_s2 + $0x5a8] sm:$0xff] %vm972_vm0, %v960_v44  ;;  %v767_v49 = vpop.permute.xlu1 %766 }
 0x13a   :  { %v965_v50 = vmul.f32 %v767_v49, %v293_v45  ;;  %v966_v51 = vmul.f32 %v767_v49, %v294_v46  ;;  %v762_v52 = vpop.permute.xlu0 %761 }
 0x13b   :  { %v963_v53 = vmul.f32 %v762_v52, %v291_v47  ;;  %v964_v54 = vmul.f32 %v762_v52, %v292_v48 }
 0x13c   :  { %1158 = vst [vmem:[%s2725_s2 + $0x5d0] sm:$0xff] %v965_v50  ;;  %1159 = vst.msk [vmem:[%s2725_s2 + $0x5d8] sm:$0xff] %vm972_vm0, %v966_v51 }
 0x13d   :  { %1156 = vst [vmem:[%s2725_s2 + $0x5c0] sm:$0xff] %v963_v53  ;;  %1157 = vst.msk [vmem:[%s2725_s2 + $0x5c8] sm:$0xff] %vm972_vm0, %v964_v54  ;;  %v777_v59 = vpop.permute.xlu1 %776 }
 0x13e   :  { %v969_v60 = vmul.f32 %v777_v59, %v297_v55  ;;  %v970_v61 = vmul.f32 %v777_v59, %v298_v56  ;;  %v772_v62 = vpop.permute.xlu0 %771 }
 0x13f   :  { %v967_v63 = vmul.f32 %v772_v62, %v295_v57  ;;  %v968_v0 = vmul.f32 %v772_v62, %v296_v58 }
 0x140   :  { %1162 = vst [vmem:[%s2725_s2 + $0x5f0] sm:$0xff] %v969_v60  ;;  %1163 = vst.msk [vmem:[%s2725_s2 + $0x5f8] sm:$0xff] %vm972_vm0, %v970_v61 }
 0x141   :  { %1160 = vst [vmem:[%s2725_s2 + $0x5e0] sm:$0xff] %v967_v63  ;;  %1161 = vst.msk [vmem:[%s2725_s2 + $0x5e8] sm:$0xff] %vm972_vm0, %v968_v0 }

</bundles_post_ra>
